<compile_context>
chip_gen: v7x
topology: tpu7x:2x2x1
jax: 0.10.0
libtpu: 0.0.40
codegen_flags: <defaults>
</compile_context>

<pallas_src>
import numpy as np
import jax
import jax.numpy as jnp
from jax.experimental import pallas as pl
from jax.experimental.pallas import tpu as pltpu


def _calayer_kernel(x_ref, w1t_ref, b1_ref, w2_ref, b2_ref, o_ref):
    # x_ref  : (C, HW)   one image, channels on sublanes, spatial on lanes
    # w1t_ref: (C, Cr)   conv1 weight, transposed  (conv1.weight is (Cr, C, 1, 1))
    # b1_ref : (1, Cr)
    # w2_ref : (C, Cr)   conv2 weight               (conv2.weight is (C, Cr, 1, 1))
    # b2_ref : (C, 1)
    # o_ref  : (C, HW)
    x = x_ref[...].astype(jnp.float32)                       # (C, HW)

    # ---- global average pool over spatial (lane reduction) ----
    m = jnp.mean(x, axis=1, keepdims=True)                   # (C, 1)

    # ---- fc1: h = relu(w1 @ m + b1), done as broadcast-mul + sublane reduce ----
    h = jnp.sum(w1t_ref[...].astype(jnp.float32) * m,
                axis=0, keepdims=True)                        # (1, Cr)
    h = jnp.maximum(h + b1_ref[...].astype(jnp.float32), 0.0)

    # ---- fc2: y = sigmoid(w2 @ h + b2), broadcast-mul + lane reduce ----
    t = jnp.sum(w2_ref[...].astype(jnp.float32) * h,
                axis=1, keepdims=True)                        # (C, 1)
    t = t + b2_ref[...].astype(jnp.float32)
    y = 1.0 / (1.0 + jnp.exp(-t))                             # sigmoid (EUP exp)

    # ---- per-channel rescale (lane-broadcast multiply), lane-dense store ----
    o_ref[...] = (x * y).astype(o_ref.dtype)


def calayer_forward(x_nchw, w1, b1, w2, b2):
    """Channel attention forward.

    x_nchw : (N, C, H, W)
    w1     : (Cr, C)  == conv1.weight.reshape(Cr, C)   (Cr = C // reduction)
    b1     : (Cr,)
    w2     : (C, Cr)  == conv2.weight.reshape(C, Cr)
    b2     : (C,)
    returns (N, C, H, W)
    """
    N, C, H, W = x_nchw.shape
    Cr = w1.shape[0]
    HW = H * W

    x2 = x_nchw.reshape(N, C, HW)          # view; no transpose, no padding
    w1t = jnp.transpose(w1)                # (C, Cr)
    b1r = b1.reshape(1, Cr)
    b2c = b2.reshape(C, 1)

    out = pl.pallas_call(
        _calayer_kernel,
        out_shape=jax.ShapeDtypeStruct((N, C, HW), x_nchw.dtype),
        grid_spec=pltpu.PrefetchScalarGridSpec(
            num_scalar_prefetch=0,
            grid=(N,),
            in_specs=[
                pl.BlockSpec((None, C, HW), lambda n: (n, 0, 0)),  # x (one image)
                pl.BlockSpec((C, Cr),       lambda n: (0, 0)),     # w1^T
                pl.BlockSpec((1, Cr),       lambda n: (0, 0)),     # b1
                pl.BlockSpec((C, Cr),       lambda n: (0, 0)),     # w2
                pl.BlockSpec((C, 1),        lambda n: (0, 0)),     # b2
            ],
            out_specs=pl.BlockSpec((None, C, HW), lambda n: (n, 0, 0)),
        ),
        compiler_params=pltpu.CompilerParams(
            dimension_semantics=("parallel",)),
    )(x2, w1t, b1r, w2, b2c)

    return out.reshape(N, C, H, W)


def _reference_calayer(x, w1, b1, w2, b2):
    """Pure-JAX reference, NCHW in/out."""
    m = jnp.mean(x, axis=(2, 3))                              # (N, C)
    h = jnp.maximum(m @ w1.T + b1[None, :], 0.0)              # (N, Cr)
    t = h @ w2.T + b2[None, :]                                # (N, C)
    y = 1.0 / (1.0 + jnp.exp(-t))
    return x * y[:, :, None, None]


if __name__ == "__main__":
    # Shapes consistent with the module defaults: channel=64, reduction=16.
    N, C, H, W = 2, 64, 16, 16
    reduction = 16
    Cr = C // reduction

    key = jax.random.PRNGKey(0)
    kx, kw1, kb1, kw2, kb2 = jax.random.split(key, 5)

    x = jax.random.normal(kx, (N, C, H, W), dtype=jnp.float32)
    # Synthetic 1x1-conv parameters (already squeezed from (out,in,1,1)).
    w1 = jax.random.normal(kw1, (Cr, C), dtype=jnp.float32) * 0.1
    b1 = jax.random.normal(kb1, (Cr,), dtype=jnp.float32) * 0.1
    w2 = jax.random.normal(kw2, (C, Cr), dtype=jnp.float32) * 0.1
    b2 = jax.random.normal(kb2, (C,), dtype=jnp.float32) * 0.1

    out = calayer_forward(x, w1, b1, w2, b2)
    out = jax.block_until_ready(out)

    ref = _reference_calayer(x, w1, b1, w2, b2)
    np.testing.assert_allclose(np.asarray(out), np.asarray(ref),
                               rtol=1e-5, atol=1e-5)

    print("KERNEL_OK")
</pallas_src>

<mosaic_0001>
module attributes {stable_mosaic.version = 11 : i64} {
  func.func @_calayer_kernel(%arg0: i32, %arg1: memref<1x64x256xf32, #tpu.memory_space<vmem>>, %arg2: memref<64x4xf32, #tpu.memory_space<vmem>>, %arg3: memref<1x4xf32, #tpu.memory_space<vmem>>, %arg4: memref<64x4xf32, #tpu.memory_space<vmem>>, %arg5: memref<64x1xf32, #tpu.memory_space<vmem>>, %arg6: memref<1x64x256xf32, #tpu.memory_space<vmem>>) attributes {dimension_semantics = [#tpu.dimension_semantics<parallel>], iteration_bounds = array<i64: 2>, scalar_prefetch = 0 : i64, scratch_operands = 0 : i64, tpu.core_type = #tpu.core_type<tc>, window_params = [{transform_indices = @transform_0, window_bounds = array<i64: 1, 64, 256>}, {pipeline_mode = #tpu.pipeline_mode<synchronous>, transform_indices = @transform_1, window_bounds = array<i64: 64, 4>}, {pipeline_mode = #tpu.pipeline_mode<synchronous>, transform_indices = @transform_2, window_bounds = array<i64: 1, 4>}, {pipeline_mode = #tpu.pipeline_mode<synchronous>, transform_indices = @transform_3, window_bounds = array<i64: 64, 4>}, {pipeline_mode = #tpu.pipeline_mode<synchronous>, transform_indices = @transform_4, window_bounds = array<i64: 64, 1>}, {transform_indices = @transform_5, window_bounds = array<i64: 1, 64, 256>}]} {
    %c0 = arith.constant 0 : index
    %c0_0 = arith.constant 0 : index
    %c0_1 = arith.constant 0 : index
    %0 = vector.load %arg1[%c0, %c0_0, %c0_1] : memref<1x64x256xf32, #tpu.memory_space<vmem>>, vector<1x64x256xf32>
    %1 = vector.shape_cast %0 : vector<1x64x256xf32> to vector<64x256xf32>
    %cst = arith.constant dense<0.000000e+00> : vector<64xf32>
    %2 = vector.multi_reduction <add>, %1, %cst [1] : vector<64x256xf32> to vector<64xf32>
    %3 = vector.shape_cast %2 : vector<64xf32> to vector<64x1xf32>
    %cst_2 = arith.constant 2.560000e+02 : f32
    %4 = vector.broadcast %cst_2 : f32 to vector<64x1xf32>
    %5 = arith.divf %3, %4 : vector<64x1xf32>
    %c0_3 = arith.constant 0 : index
    %c0_4 = arith.constant 0 : index
    %6 = vector.load %arg2[%c0_3, %c0_4] : memref<64x4xf32, #tpu.memory_space<vmem>>, vector<64x4xf32>
    %7 = vector.broadcast %5 : vector<64x1xf32> to vector<64x4xf32>
    %8 = arith.mulf %6, %7 : vector<64x4xf32>
    %cst_5 = arith.constant dense<0.000000e+00> : vector<4xf32>
    %9 = vector.multi_reduction <add>, %8, %cst_5 [0] : vector<64x4xf32> to vector<4xf32>
    %10 = vector.shape_cast %9 : vector<4xf32> to vector<1x4xf32>
    %c0_6 = arith.constant 0 : index
    %c0_7 = arith.constant 0 : index
    %11 = vector.load %arg3[%c0_6, %c0_7] : memref<1x4xf32, #tpu.memory_space<vmem>>, vector<1x4xf32>
    %12 = arith.addf %10, %11 : vector<1x4xf32>
    %cst_8 = arith.constant 0.000000e+00 : f32
    %13 = vector.broadcast %cst_8 : f32 to vector<1x4xf32>
    %14 = arith.maximumf %12, %13 : vector<1x4xf32>
    %c0_9 = arith.constant 0 : index
    %c0_10 = arith.constant 0 : index
    %15 = vector.load %arg4[%c0_9, %c0_10] : memref<64x4xf32, #tpu.memory_space<vmem>>, vector<64x4xf32>
    %16 = vector.broadcast %14 : vector<1x4xf32> to vector<64x4xf32>
    %17 = arith.mulf %15, %16 : vector<64x4xf32>
    %cst_11 = arith.constant dense<0.000000e+00> : vector<64xf32>
    %18 = vector.multi_reduction <add>, %17, %cst_11 [1] : vector<64x4xf32> to vector<64xf32>
    %19 = vector.shape_cast %18 : vector<64xf32> to vector<64x1xf32>
    %c0_12 = arith.constant 0 : index
    %c0_13 = arith.constant 0 : index
    %20 = vector.load %arg5[%c0_12, %c0_13] : memref<64x1xf32, #tpu.memory_space<vmem>>, vector<64x1xf32>
    %21 = arith.addf %19, %20 : vector<64x1xf32>
    %cst_14 = arith.constant 0.000000e+00 : f32
    %22 = vector.broadcast %cst_14 : f32 to vector<64x1xf32>
    %23 = arith.subf %22, %21 : vector<64x1xf32>
    %24 = math.exp %23 : vector<64x1xf32>
    %cst_15 = arith.constant 1.000000e+00 : f32
    %25 = vector.broadcast %cst_15 : f32 to vector<64x1xf32>
    %26 = arith.addf %25, %24 : vector<64x1xf32>
    %cst_16 = arith.constant 1.000000e+00 : f32
    %27 = vector.broadcast %cst_16 : f32 to vector<64x1xf32>
    %28 = arith.divf %27, %26 : vector<64x1xf32>
    %29 = vector.broadcast %28 : vector<64x1xf32> to vector<64x256xf32>
    %30 = arith.mulf %1, %29 : vector<64x256xf32>
    %c0_17 = arith.constant 0 : index
    %c0_18 = arith.constant 0 : index
    %c0_19 = arith.constant 0 : index
    %31 = vector.load %arg6[%c0_17, %c0_18, %c0_19] : memref<1x64x256xf32, #tpu.memory_space<vmem>>, vector<1x64x256xf32>
    %32 = vector.shape_cast %31 : vector<1x64x256xf32> to vector<64x256xf32>
    %33 = vector.shape_cast %30 : vector<64x256xf32> to vector<1x64x256xf32>
    tpu.vector_store %arg6[%c0_17, %c0_18, %c0_19], %33 {strides = array<i32>} : memref<1x64x256xf32, #tpu.memory_space<vmem>>, vector<1x64x256xf32>,
    return
  }
  func.func @transform_0(%arg0: i32) -> (i32, i32, i32) {
    %c0_i32 = arith.constant 0 : i32
    %c0_i32_0 = arith.constant 0 : i32
    %c0_i32_1 = arith.constant 0 : i32
    return %arg0, %c0_i32, %c0_i32_0 : i32, i32, i32
  }
  func.func @transform_1(%arg0: i32) -> (i32, i32) {
    %c0_i32 = arith.constant 0 : i32
    %c0_i32_0 = arith.constant 0 : i32
    %c0_i32_1 = arith.constant 0 : i32
    return %c0_i32, %c0_i32_0 : i32, i32
  }
  func.func @transform_2(%arg0: i32) -> (i32, i32) {
    %c0_i32 = arith.constant 0 : i32
    %c0_i32_0 = arith.constant 0 : i32
    %c0_i32_1 = arith.constant 0 : i32
    return %c0_i32, %c0_i32_0 : i32, i32
  }
  func.func @transform_3(%arg0: i32) -> (i32, i32) {
    %c0_i32 = arith.constant 0 : i32
    %c0_i32_0 = arith.constant 0 : i32
    %c0_i32_1 = arith.constant 0 : i32
    return %c0_i32, %c0_i32_0 : i32, i32
  }
  func.func @transform_4(%arg0: i32) -> (i32, i32) {
    %c0_i32 = arith.constant 0 : i32
    %c0_i32_0 = arith.constant 0 : i32
    %c0_i32_1 = arith.constant 0 : i32
    return %c0_i32, %c0_i32_0 : i32, i32
  }
  func.func @transform_5(%arg0: i32) -> (i32, i32, i32) {
    %c0_i32 = arith.constant 0 : i32
    %c0_i32_0 = arith.constant 0 : i32
    %c0_i32_1 = arith.constant 0 : i32
    return %arg0, %c0_i32, %c0_i32_0 : i32, i32, i32
  }
}

</mosaic_0001>

<bundles_post_ra>
// kernel: tpu_custom_call.1
= control target key start
LH: loop header
LB: loop body
LE: loop exit
PB: predicated region body
PF: predicated region fallthrough
CT: control target
= control target key end

     0   :  { %10 = vsyncpa [#allocation3], 0  ;;  %s1176_s0 = inlined_call_operand.hbm [shape: f32[2,64,256], index: 0, kind: input, shape index: {}]   ;;  %s1177_s1 = inlined_call_operand.vmem [shape: f32[64,4], index: 1, kind: input, shape index: {}]   ;;  %s1178_s2 = inlined_call_operand.vmem [shape: f32[1,4], index: 2, kind: input, shape index: {}]   ;;  %s1179_s3 = inlined_call_operand.vmem [shape: f32[64,4], index: 3, kind: input, shape index: {}]   ;;  %s1180_s4 = inlined_call_operand.vmem [shape: f32[64,1], index: 4, kind: input, shape index: {}]   ;;  %s1181_s5 = inlined_call_operand.hbm [shape: f32[2,64,256], index: 5, kind: output, shape index: {}]  }
   0x1   :  { %12 = vsyncpa [#allocation3 + $0x1], 0 }
   0x2   :  { %13 = vsyncpa [#allocation4], 0 }
   0x3   :  { %15 = vsyncpa [#allocation4 + $0x1], 0  ;;  %s836_s18 = smov 0   ;;  %s838_s19 = smov 0  }
   0x4   :  { %s840_s20 = smov 0   ;;  %s842_s21 = smov 0  }
   0x5 LB: > { %s857_s22 = sadd.s32 4294967295, %s797_s21   ;;  %s600_s23 = sadd.s32 4294967294, %s797_s21   ;;  %s797_s21 = sphi %s842_s21, %s1194_s21   ;;  %s793_s20 = sphi %s840_s20, %s1193_s20   ;;  %s789_s19 = sphi %s838_s19, %s1192_s19   ;;  %s785_s18 = sphi %s836_s18, %s1191_s18  }
   0x6   : > { %s861_s24 = sadd.s32 1, %s797_s21   ;;  %s28_s25 = sadd.s32 1, %s793_s20 }
   0x7   : > { %s25_s26 = ssub.s32 %s797_s21, %s861_s24  ;;  %p35_p0 = scmp.ne.s32.totalorder %s793_s20, %s789_s19 }
   0x8   : > { %p26_p1 = scmp.eq.s32.totalorder %s25_s26, 0  ;;  %p36_p2 = scmp.eq.s32.totalorder %s797_s21, 0 }
   0x9   : > { %p41_p3 = scmp.ne.s32.totalorder %s789_s19, %s785_s18  ;;  %p42_p4 = scmp.eq.s32.totalorder %s857_s22, 0 }
   0xa   : > { %s873_s27 = scalar_select %p26_p1, %s793_s20, %s28_s25  }
   0xb   : > { %p875_p5 = por %p36_p2, %p35_p0  ;;  %p879_p6 = por %p42_p4, %p41_p3 }
   0xc   : > { %p149_p7 = scmp.eq.s32.totalorder %s857_s22, 1  ;;  %p155_p8 = scmp.eq.s32.totalorder %s600_s23, 1 }
   0xd   : > { %p628_p10 = scmp.lt.s32.totalorder %s797_s21, 2  ;;  %s187_s7 = sand.u32 1, %s793_s20  }
   0xe   : > { %p886_p11 = por %p149_p7, %p35_p0  ;;  %p890_p12 = por %p155_p8, %p41_p3 }
   0xf   : > { %s614_s8 = sshll.u32 %s797_s21, 11  ;;  %s603_s9 = sshll.u32 %s187_s7, 7 }
  0x10   : > { %s1185_s30 = scalar_select %p886_p11, 1, 0 }
  0x11   : > { %s1186_s6 = scalar_select %p890_p12, 1, 0 }
  0x12   : > { %s899_s12 = scalar_lea.hbm %s1176_s0, %s614_s8  ;;  %s191_s13 = scalar_lea.vmem [#allocation2], %s603_s9 }
  0x13   : > { %s198_s14 = sshll.u32 %s191_s13, 4  ;;  %p903_p13 = pnand %p628_p10, %p875_p5  ;;  %s907_s14 = int_to_ptr.vmem [resolvable:$true] %s198_s14 }
  0x14   : > { %s909_s16 = scalar_lea.sflag [#allocation3], %s187_s7  ;;  %s701_s17 = scalar_lea.hbm %s899_s12, 2048 }
  0x15   : > { %p702_p0 = scmp.ne.s32.totalorder %s899_s12, %s701_s17  ;;  %p703_p1 = pneg %p903_p13 }
  0x16   : > { %s706_s26 = scalar_lea.hbm %s1176_s0, 4096  ;;  %p707_p4 = scmp.lt.u32.totalorder %s899_s12, %s1176_s0 }
  0x17   : > { %p704_p2 = pnand %p703_p1, %p702_p0  ;;  %p708_p5 = scmp.lt.u32.totalorder %s706_s26, %s701_s17 }
  0x18   : > { %p710_p8 = scmp.lt.u32.totalorder %s701_s17, %s899_s12 }
  0x19   : > { %p705_p3 = pneg %p704_p2  ;;  %p709_p7 = por %p708_p5, %p707_p4 }
  0x1b   : > { %p711_p10 = por %p710_p8, %p709_p7 }
  0x1d   : > { %p712_p9 = pnand %p711_p10, %p705_p3 }
  0x1f   : > { %715 = shalt.err (!%p712_p9)
}
  0x20   : > { %s716_s7 = scalar_lea.vmem %s907_s14, 2048  ;;  %s799_s9 = smov [#allocation2]  }
  0x21   : > { %p717_p0 = scmp.ne.s32.totalorder %s907_s14, %s716_s7  ;;  %s721_s10 = sshll.u32 %s799_s9, 4  ;;  %s722_s10 = int_to_ptr.vmem [resolvable:$false] %s721_s10 }
  0x22   : > { %s723_s11 = scalar_lea.vmem %s722_s10, 4096  ;;  %p724_p11 = scmp.lt.s32.totalorder %s907_s14, %s722_s10 }
  0x23   : > { %p719_p2 = pnand %p717_p0, %p703_p1  ;;  %p725_p4 = scmp.lt.s32.totalorder %s723_s11, %s716_s7 }
  0x25   : > { %p720_p12 = pneg %p719_p2  ;;  %p726_p5 = por %p725_p4, %p724_p11 }
  0x27   : > { %p727_p7 = pnand %p726_p5, %p720_p12 }
  0x29   : > { %730 = shalt.err (!%p727_p7)
}
  0x2a   : > { %s800_s13 = smov 256   ;;  %s801_s17 = smov 16  }
  0x2b   : > { %623 = dma.hbm_to_vmem [thread:$0]  (!%p903_p13), %s899_s12, 2048, %s907_s14, %s909_s16, %s800_s13, %s800_s13, %s801_s17  }
  0x2c   : > { %p606_p9 = scmp.ge.s32.totalorder %s797_s21, 1  ;;  %p206_p1 = scmp.lt.s32.totalorder %s797_s21, 3 }
  0x2e   : > { %p207_p3 = pnand %p606_p9, %p206_p1 }
  0x2f   : > { %s940_s23 = sand.u32 (!%p207_p3), 1, %s789_s19  }
  0x30   : > { %210 = sbr.rel (%p207_p3) target bundleno = 587 (0x24b), region = 40  ;;  %s607_s25 = sshll.u32 (!%p207_p3), %s940_s23, 7 }
  0x31   : > { %s213_s26 = scalar_lea.sflag (!%p207_p3), [#allocation3], %s940_s23  ;;  %s216_s28 = scalar_lea.vmem (!%p207_p3), [#allocation2], %s607_s25 }
  0x37   : > { %776 = dma.done.wait (%p879_p6), %s213_s26, 2048  }
  0x38   : > { %778 = vsyncadd (%p879_p6), %s213_s26, 4294965248  ;;  %v950_v0 = vld [vmem:[%s216_s28] sm:$0xff]  ;;  %v952_v1 = vld [vmem:[%s216_s28 + $0x8] sm:$0xff]  ;;  %vm308_vm0 = vcmask 31744   ;;  %s1095_s10 = scalar_lea.vmem [#allocation5], %s607_s25  ;;  %s615_s25 = sshll.u32 %s857_s22, 11 }
  0x39   : > { %v954_v2 = vld [vmem:[%s216_s28 + $0x20] sm:$0xff]  ;;  %v259_v3 = vadd.f32 %v952_v1, %v950_v0  ;;  %v958_v4 = vld [vmem:[%s216_s28 + $0x28] sm:$0xff]  ;;  %v960_v5 = vld [vmem:[%s216_s28 + $0x10] sm:$0xff]  ;;  %s527_s11 = sshll.u32 %s1095_s10, 4  ;;  %s1126_s26 = scalar_lea.hbm %s1181_s5, %s615_s25  ;;  %s1128_s11 = int_to_ptr.vmem [resolvable:$true] %s527_s11 }
  0x3a   : > { %v962_v6 = vld [vmem:[%s216_s28 + $0x18] sm:$0xff]  ;;  %v265_v7 = vadd.f32 %v958_v4, %v954_v2  ;;  %v966_v8 = vld [vmem:[%s216_s28 + $0x30] sm:$0xff]  ;;  %v974_v12 = vld [vmem:[%s216_s28 + $0x40] sm:$0xff]  ;;  %s514_s22 = scalar_lea.sflag [#allocation4], %s940_s23  ;;  %p1188_p11 = scmp.ne.s32.totalorder %s1185_s30, 0 }
  0x3b   : > { %v968_v9 = vld [vmem:[%s216_s28 + $0x38] sm:$0xff]  ;;  %260 = vadd.xlane.f32.xlu0 %v259_v3  ;;  %v262_v10 = vadd.f32 %v962_v6, %v960_v5  ;;  %v976_v13 = vld [vmem:[%s216_s28 + $0x48] sm:$0xff]  ;;  %v978_v14 = vld [vmem:[%s216_s28 + $0x50] sm:$0xff]  ;;  %s803_s29 = smov [#allocation5]  }
  0x3c   : > { %266 = vadd.xlane.f32.xlu1 %v265_v7  ;;  %v268_v11 = vadd.f32 %v968_v9, %v966_v8  ;;  %v980_v15 = vld [vmem:[%s216_s28 + $0x58] sm:$0xff]  ;;  %v271_v16 = vadd.f32 %v976_v13, %v974_v12  ;;  %v986_v18 = vld [vmem:[%s216_s28 + $0x60] sm:$0xff]  ;;  %v988_v19 = vld [vmem:[%s216_s28 + $0x68] sm:$0xff]  ;;  %s735_s12 = sshll.u32 %s803_s29, 4  ;;  %s736_s12 = int_to_ptr.vmem [resolvable:$false] %s735_s12 }
  0x3d   : > { %v274_v17 = vadd.f32 %v980_v15, %v978_v14  ;;  %v990_v20 = vld [vmem:[%s216_s28 + $0x70] sm:$0xff]  ;;  %v992_v21 = vld [vmem:[%s216_s28 + $0x78] sm:$0xff]  ;;  %v277_v22 = vadd.f32 %v988_v19, %v986_v18  ;;  %v292_v27 = vld [vmem:[%s1177_s1] sm:$0xff]  ;;  %s731_s28 = scalar_lea.vmem %s1128_s11, 2048  ;;  %s737_s14 = scalar_lea.vmem %s736_s12, 4096 }
  0x3e   : > { %v280_v23 = vadd.f32 %v992_v21, %v990_v20  ;;  %v294_v29 = vld [vmem:[%s1177_s1 + $0x10] sm:$0xff]  ;;  %v293_v30 = vld [vmem:[%s1177_s1 + $0x8] sm:$0xff]  ;;  %v295_v34 = vld [vmem:[%s1177_s1 + $0x18] sm:$0xff]  ;;  %p732_p6 = scmp.ne.s32.totalorder %s1128_s11, %s731_s28  ;;  %p738_p8 = scmp.lt.s32.totalorder %s1128_s11, %s736_s12 }
  0x3f   : > { %263 = vadd.xlane.f32.xlu0 %v262_v10  ;;  %v296_v40 = vld [vmem:[%s1177_s1 + $0x20] sm:$0xff]  ;;  %v297_v45 = vld [vmem:[%s1177_s1 + $0x28] sm:$0xff]  ;;  %v298_v54 = vld [vmem:[%s1177_s1 + $0x30] sm:$0xff]  ;;  %p739_p10 = scmp.lt.s32.totalorder %s737_s14, %s731_s28 }
  0x40   : > { %269 = vadd.xlane.f32.xlu1 %v268_v11  ;;  %v299_v58 = vld [vmem:[%s1177_s1 + $0x38] sm:$0xff]  ;;  %p733_p12 = pnand %p732_p6, %p1188_p11 }
  0x41   : > { %p740_p0 = por %p739_p10, %p738_p8 }
  0x42   : > { %p734_p13 = pneg %p733_p12 }
  0x43   : > { %272 = vadd.xlane.f32.xlu0 %v271_v16 }
  0x44   : > { %275 = vadd.xlane.f32.xlu1 %v274_v17  ;;  %p741_p2 = pnand %p740_p0, %p734_p13 }
  0x47   : > { %278 = vadd.xlane.f32.xlu0 %v277_v22 }
  0x48   : > { %281 = vadd.xlane.f32.xlu1 %v280_v23 }
  0xc8   : > { %v261_v24 = vpop.xlane.xlu0 %260 }
  0xc9   : > { %v284_v25 = vmul.f32 0.00390625, %v261_v24  ;;  %v267_v26 = vpop.xlane.xlu1 %266 }
  0xca   : > { %v286_v28 = vmul.f32 0.00390625, %v267_v26 }
  0xcb   : > { %v300_v32 = vmul.f32 %v292_v27, %v284_v25  ;;  %v341_v25 = vlaneseq }
  0xcc   : > { %v264_v31 = vpop.xlane.xlu0 %263  ;;  %v302_v37 = vmul.f32 %v294_v29, %v286_v28 }
  0xcd   : > { %v285_v33 = vmul.f32 0.00390625, %v264_v31  ;;  %v270_v35 = vpop.xlane.xlu1 %269  ;;  %v309_v42 = vsel %vm308_vm0, %v300_v32, 0.0  ;;  %v342_v28 = vshrl.u32 %v341_v25, 7 }
  0xce   : > { %v287_v36 = vmul.f32 0.00390625, %v270_v35  ;;  %v312_v49 = vsel %vm308_vm0, %v302_v37, 0.0  ;;  %v334_v35 = vld [vmem:[%s1179_s3 + $0x8] sm:$0xff] }
  0xcf   : > { %v301_v38 = vmul.f32 %v293_v30, %v285_v33  ;;  %v330_v30 = vld [vmem:[%s1178_s2] sm:$0x1]  ;;  %v343_v32 = vsub.s32 0, %v342_v28 }
  0xd0   : > { %v303_v39 = vmul.f32 %v295_v34, %v287_v36  ;;  %v273_v41 = vpop.xlane.xlu0 %272  ;;  %v333_v36 = vld [vmem:[%s1179_s3] sm:$0xff] }
  0xd1   : > { %v310_v43 = vsel %vm308_vm0, %v301_v38, 0.0  ;;  %v288_v44 = vmul.f32 0.00390625, %v273_v41  ;;  %v276_v46 = vpop.xlane.xlu1 %275  ;;  %v336_v38 = vld [vmem:[%s1179_s3 + $0x18] sm:$0xff] }
  0xd2   : > { %v311_v47 = vadd.f32 %v310_v43, %v309_v42  ;;  %v289_v48 = vmul.f32 0.00390625, %v276_v46  ;;  %v314_v50 = vsel %vm308_vm0, %v303_v39, 0.0  ;;  %v335_v39 = vld [vmem:[%s1179_s3 + $0x10] sm:$0xff]  ;;  %v338_v46 = vld [vmem:[%s1179_s3 + $0x28] sm:$0xff] }
  0xd3   : > { %v304_v51 = vmul.f32 %v296_v40, %v288_v44 }
  0xd4   : > { %v313_v52 = vadd.f32 %v312_v49, %v311_v47  ;;  %v305_v53 = vmul.f32 %v297_v45, %v289_v48  ;;  %v279_v55 = vpop.xlane.xlu0 %278  ;;  %v337_v47 = vld [vmem:[%s1179_s3 + $0x20] sm:$0xff] }
  0xd5   : > { %v316_v56 = vsel %vm308_vm0, %v304_v51, 0.0  ;;  %v290_v57 = vmul.f32 0.00390625, %v279_v55  ;;  %v282_v59 = vpop.xlane.xlu1 %281 }
  0xd6   : > { %v315_v60 = vadd.f32 %v314_v50, %v313_v52  ;;  %v291_v61 = vmul.f32 0.00390625, %v282_v59  ;;  %v318_v62 = vsel %vm308_vm0, %v305_v53, 0.0  ;;  %v340_v52 = vld [vmem:[%s1179_s3 + $0x38] sm:$0xff]  ;;  %v339_v53 = vld [vmem:[%s1179_s3 + $0x30] sm:$0xff] }
  0xd7   : > { %v306_v63 = vmul.f32 %v298_v54, %v290_v57 }
  0xd8   : > { %v317_v3 = vadd.f32 %v316_v56, %v315_v60  ;;  %v307_v7 = vmul.f32 %v299_v58, %v291_v61  ;;  %v802_v60 = vmov 0   ;;  %v378_v61 = vld [vmem:[%s1180_s4 + $0x8] sm:$0xff] }
  0xd9   : > { %v320_v10 = vsel %vm308_vm0, %v306_v63, 0.0  ;;  %668 = vset.pattern.permute.xlu1 %v802_v60  ;;  %667 = vset.pattern.permute.xlu0 %v802_v60 }
  0xda   : > { %v319_v11 = vadd.f32 %v318_v62, %v317_v3  ;;  %v322_v16 = vsel %vm308_vm0, %v307_v7, 0.0  ;;  %v377_v62 = vld [vmem:[%s1180_s4] sm:$0xff] }
  0xdc   : > { %v321_v17 = vadd.f32 %v320_v10, %v319_v11  ;;  %v380_v11 = vld [vmem:[%s1180_s4 + $0x18] sm:$0xff] }
  0xde   : > { %v323_v22 = vadd.f32 %v322_v16, %v321_v17  ;;  %v379_v16 = vld [vmem:[%s1180_s4 + $0x10] sm:$0xff] }
  0xe0   : > { %v324_v23 = vrot.slane %v323_v22, 4 }
  0xe2   : > { %v325_v24 = vadd.f32 %v324_v23, %v323_v22 }
  0xe4   : > { %v326_v26 = vrot.slane %v325_v24, 2 }
  0xe6   : > { %v327_v27 = vadd.f32 %v326_v26, %v325_v24 }
  0xe8   : > { %v328_v29 = vrot.slane %v327_v27, 1 }
  0xea   : > { %v329_v31 = vadd.f32 %v328_v29, %v327_v27  ;;  %v382_v29 = vld [vmem:[%s1180_s4 + $0x28] sm:$0xff] }
  0xec   : > { %v331_v33 = vadd.f32 %v330_v30, %v329_v31  ;;  %v381_v30 = vld [vmem:[%s1180_s4 + $0x20] sm:$0xff] }
  0xee   : > { %v332_v34 = vmax.f32 %v331_v33, 0.0 }
  0xf0   : > { %v344_v37 = vrot.slane %v332_v34, %v343_v32 }
  0xf2   : > { %v346_v40 = vmul.f32 %v344_v37, %v334_v35  ;;  %v345_v41 = vmul.f32 %v344_v37, %v333_v36  ;;  %v348_v44 = vmul.f32 %v344_v37, %v336_v38  ;;  %v347_v45 = vmul.f32 %v344_v37, %v335_v39  ;;  %v383_v39 = vld [vmem:[%s1180_s4 + $0x30] sm:$0xff] }
  0xf3   : > { %v350_v50 = vmul.f32 %v344_v37, %v338_v46  ;;  %v349_v51 = vmul.f32 %v344_v37, %v337_v47  ;;  %v352_v56 = vmul.f32 %v344_v37, %v340_v52  ;;  %v351_v57 = vmul.f32 %v344_v37, %v339_v53 }
  0xf4   : > { %v356_v42 = vsel %vm308_vm0, %v346_v40, 0.0  ;;  %v353_v43 = vsel %vm308_vm0, %v345_v41, 0.0  ;;  %v362_v48 = vsel %vm308_vm0, %v348_v44, 0.0  ;;  %v359_v49 = vsel %vm308_vm0, %v347_v45, 0.0  ;;  %v384_v44 = vld [vmem:[%s1180_s4 + $0x38] sm:$0xff] }
  0xf5   : > { %357 = vadd.xlane.f32.xlu1 %v356_v42  ;;  %354 = vadd.xlane.f32.xlu0 %v353_v43  ;;  %v368_v54 = vsel %vm308_vm0, %v350_v50, 0.0  ;;  %v365_v55 = vsel %vm308_vm0, %v349_v51, 0.0  ;;  %v374_v58 = vsel %vm308_vm0, %v352_v56, 0.0  ;;  %v371_v59 = vsel %vm308_vm0, %v351_v57, 0.0 }
  0xf9   : > { %363 = vadd.xlane.f32.xlu1 %v362_v48  ;;  %360 = vadd.xlane.f32.xlu0 %v359_v49 }
  0xfd   : > { %369 = vadd.xlane.f32.xlu1 %v368_v54  ;;  %366 = vadd.xlane.f32.xlu0 %v365_v55 }
 0x101   : > { %375 = vadd.xlane.f32.xlu1 %v374_v58  ;;  %372 = vadd.xlane.f32.xlu0 %v371_v59 }
 0x182   : > { %v358_v63 = vpop.xlane.xlu1 %357  ;;  %v355_v3 = vpop.xlane.xlu0 %354 }
 0x183   : > { %v386_v7 = vadd.f32 %v378_v61, %v358_v63  ;;  %v385_v10 = vadd.f32 %v377_v62, %v355_v3 }
 0x185   : > { %v394_v17 = vsub.f32 0.0, %v386_v7  ;;  %v393_v22 = vsub.f32 0.0, %v385_v10 }
 0x186   : > { %v364_v23 = vpop.xlane.xlu1 %363  ;;  %v361_v24 = vpop.xlane.xlu0 %360 }
 0x187   : > { %v403_v25 = vmul.f32 1.442695, %v394_v17  ;;  %v401_v26 = vmul.f32 1.442695, %v393_v22  ;;  %v388_v27 = vadd.f32 %v380_v11, %v364_v23  ;;  %v387_v28 = vadd.f32 %v379_v16, %v361_v24 }
 0x189   : > { %669 = vpow2.f32 %v403_v25  ;;  %v396_v31 = vsub.f32 0.0, %v388_v27  ;;  %v395_v32 = vsub.f32 0.0, %v387_v28 }
 0x18a   : > { %671 = vpow2.f32 %v401_v26  ;;  %v370_v33 = vpop.xlane.xlu1 %369  ;;  %v367_v34 = vpop.xlane.xlu0 %366 }
 0x18b   : > { %v407_v35 = vmul.f32 1.442695, %v396_v31  ;;  %v405_v36 = vmul.f32 1.442695, %v395_v32  ;;  %v390_v37 = vadd.f32 %v382_v29, %v370_v33  ;;  %v389_v38 = vadd.f32 %v381_v30, %v367_v34 }
 0x18d   : > { %673 = vpow2.f32 %v407_v35  ;;  %v398_v40 = vsub.f32 0.0, %v390_v37  ;;  %v397_v41 = vsub.f32 0.0, %v389_v38 }
 0x18e   : > { %675 = vpow2.f32 %v405_v36  ;;  %v373_v42 = vpop.xlane.xlu0 %372  ;;  %v376_v45 = vpop.xlane.xlu1 %375 }
 0x18f   : > { %v409_v43 = vmul.f32 1.442695, %v397_v41  ;;  %v391_v46 = vadd.f32 %v383_v39, %v373_v42  ;;  %v411_v47 = vmul.f32 1.442695, %v398_v40  ;;  %v392_v48 = vadd.f32 %v384_v44, %v376_v45 }
 0x191   : > { %677 = vpow2.f32 %v409_v43  ;;  %v399_v49 = vsub.f32 0.0, %v391_v46  ;;  %v400_v54 = vsub.f32 0.0, %v392_v48 }
 0x192   : > { %679 = vpow2.f32 %v411_v47 }
 0x193   : > { %v670_v50 = vpop.eup %669  ;;  %v413_v55 = vmul.f32 1.442695, %v399_v49  ;;  %v415_v59 = vmul.f32 1.442695, %v400_v54 }
 0x194   : > { %v672_v51 = vpop.eup %671  ;;  %v418_v52 = vadd.f32 1.0, %v670_v50 }
 0x195   : > { %v417_v53 = vadd.f32 1.0, %v672_v51 }
 0x196   : > { %681 = vrcp.f32 %v418_v52 }
 0x197   : > { %v674_v56 = vpop.eup %673  ;;  %683 = vrcp.f32 %v417_v53 }
 0x198   : > { %v676_v57 = vpop.eup %675  ;;  %685 = vpow2.f32 %v413_v55  ;;  %v420_v60 = vadd.f32 1.0, %v674_v56 }
 0x199   : > { %v419_v58 = vadd.f32 1.0, %v676_v57 }
 0x19b   : > { %687 = vrcp.f32 %v419_v58  ;;  %v678_v61 = vpop.eup %677 }
 0x19c   : > { %689 = vpow2.f32 %v415_v59  ;;  %v680_v62 = vpop.eup %679  ;;  %v421_v63 = vadd.f32 1.0, %v678_v61 }
 0x19d   : > { %691 = vrcp.f32 %v420_v60  ;;  %v422_v10 = vadd.f32 1.0, %v680_v62 }
 0x19e   : > { %693 = vrcp.f32 %v421_v63 }
 0x19f   : > { %695 = vrcp.f32 %v422_v10 }
 0x1a0   : > { %v682_v3 = vpop.eup %681 }
 0x1a1   : > { %v684_v7 = vpop.eup %683  ;;  %448 = vperm.xlu1 %668, %v682_v3  }
 0x1a2   : > { %443 = vperm.xlu0 %667, %v684_v7   ;;  %v686_v11 = vpop.eup %685 }
 0x1a3   : > { %v423_v17 = vadd.f32 1.0, %v686_v11 }
 0x1a5   : > { %v688_v16 = vpop.eup %687  ;;  %697 = vrcp.f32 %v423_v17 }
 0x1a6   : > { %453 = vperm.xlu1 %668, %v688_v16   ;;  %v690_v22 = vpop.eup %689 }
 0x1a7   : > { %v692_v23 = vpop.eup %691  ;;  %v424_v24 = vadd.f32 1.0, %v690_v22 }
 0x1a8   : > { %v694_v25 = vpop.eup %693 }
 0x1a9   : > { %699 = vrcp.f32 %v424_v24  ;;  %v696_v26 = vpop.eup %695 }
 0x1aa   : > { %458 = vperm.xlu1 %668, %v692_v23  }
 0x1ae   : > { %463 = vperm.xlu1 %668, %v694_v25  }
 0x1af   : > { %v698_v27 = vpop.eup %697 }
 0x1b2   : > { %468 = vperm.xlu1 %668, %v696_v26  }
 0x1b3   : > { %v700_v28 = vpop.eup %699 }
 0x1b6   : > { %473 = vperm.xlu1 %668, %v698_v27  }
 0x1ba   : > { %478 = vperm.xlu1 %668, %v700_v28  }
 0x220   : > { %v449_v29 = vpop.permute.xlu1 %448 }
 0x221   : > { %v483_v30 = vmul.f32 %v449_v29, %v960_v5  ;;  %v484_v31 = vmul.f32 %v449_v29, %v962_v6  ;;  %v444_v32 = vpop.permute.xlu0 %443 }
 0x222   : > { %v481_v33 = vmul.f32 %v444_v32, %v950_v0  ;;  %v482_v34 = vmul.f32 %v444_v32, %v952_v1 }
 0x223   : > { %499 = vst [vmem:[%s1095_s10 + $0x10] sm:$0xff] %v483_v30  ;;  %500 = vst [vmem:[%s1095_s10 + $0x18] sm:$0xff] %v484_v31 }
 0x224   : > { %497 = vst [vmem:[%s1095_s10] sm:$0xff] %v481_v33  ;;  %498 = vst [vmem:[%s1095_s10 + $0x8] sm:$0xff] %v482_v34 }
 0x225   : > { %v454_v0 = vpop.permute.xlu1 %453 }
 0x226   : > { %v485_v1 = vmul.f32 %v454_v0, %v954_v2  ;;  %v486_v5 = vmul.f32 %v454_v0, %v958_v4 }
 0x228   : > { %501 = vst [vmem:[%s1095_s10 + $0x20] sm:$0xff] %v485_v1  ;;  %502 = vst [vmem:[%s1095_s10 + $0x28] sm:$0xff] %v486_v5 }
 0x229   : > { %v459_v6 = vpop.permute.xlu1 %458 }
 0x22a   : > { %v487_v35 = vmul.f32 %v459_v6, %v966_v8  ;;  %v488_v36 = vmul.f32 %v459_v6, %v968_v9 }
 0x22c   : > { %503 = vst [vmem:[%s1095_s10 + $0x30] sm:$0xff] %v487_v35  ;;  %504 = vst [vmem:[%s1095_s10 + $0x38] sm:$0xff] %v488_v36 }
 0x22d   : > { %v464_v37 = vpop.permute.xlu1 %463 }
 0x22e   : > { %v489_v2 = vmul.f32 %v464_v37, %v974_v12  ;;  %v490_v4 = vmul.f32 %v464_v37, %v976_v13 }
 0x230   : > { %505 = vst [vmem:[%s1095_s10 + $0x40] sm:$0xff] %v489_v2  ;;  %506 = vst [vmem:[%s1095_s10 + $0x48] sm:$0xff] %v490_v4 }
 0x231   : > { %v469_v38 = vpop.permute.xlu1 %468 }
 0x232   : > { %v491_v39 = vmul.f32 %v469_v38, %v978_v14  ;;  %v492_v8 = vmul.f32 %v469_v38, %v980_v15 }
 0x234   : > { %507 = vst [vmem:[%s1095_s10 + $0x50] sm:$0xff] %v491_v39  ;;  %508 = vst [vmem:[%s1095_s10 + $0x58] sm:$0xff] %v492_v8 }
 0x235   : > { %v474_v9 = vpop.permute.xlu1 %473 }
 0x236   : > { %v493_v40 = vmul.f32 %v474_v9, %v986_v18  ;;  %v494_v12 = vmul.f32 %v474_v9, %v988_v19 }
 0x238   : > { %509 = vst [vmem:[%s1095_s10 + $0x60] sm:$0xff] %v493_v40  ;;  %510 = vst [vmem:[%s1095_s10 + $0x68] sm:$0xff] %v494_v12 }
 0x239   : > { %v479_v13 = vpop.permute.xlu1 %478 }
 0x23a   : > { %v495_v14 = vmul.f32 %v479_v13, %v990_v20  ;;  %v496_v15 = vmul.f32 %v479_v13, %v992_v21 }
 0x23c   : > { %511 = vst [vmem:[%s1095_s10 + $0x70] sm:$0xff] %v495_v14  ;;  %512 = vst [vmem:[%s1095_s10 + $0x78] sm:$0xff] %v496_v15 }
 0x23d   : > { %744 = shalt.err (!%p741_p2)
}
 0x23e   : > { %s745_s15 = scalar_lea.hbm %s1126_s26, 2048  ;;  %s749_s7 = scalar_lea.hbm %s1181_s5, 4096 }
 0x23f   : > { %p746_p4 = scmp.ne.s32.totalorder %s1126_s26, %s745_s15  ;;  %p750_p9 = scmp.lt.u32.totalorder %s1126_s26, %s1181_s5 }
 0x240   : > { %p751_p1 = scmp.lt.u32.totalorder %s749_s7, %s745_s15  ;;  %p753_p6 = scmp.lt.u32.totalorder %s745_s15, %s1126_s26 }
 0x241   : > { %p747_p5 = pnand %p746_p4, %p1188_p11 }
 0x242   : > { %p752_p3 = por %p751_p1, %p750_p9 }
 0x243   : > { %p748_p7 = pneg %p747_p5 }
 0x244   : > { %p754_p12 = por %p753_p6, %p752_p3 }
 0x246   : > { %p755_p13 = pnand %p754_p12, %p748_p7 }
 0x248   : > { %758 = shalt.err (!%p755_p13)
}
 0x249   : > { %s804_s25 = smov 256   ;;  %s805_s13 = smov 16  }
 0x24a   : > { %618 = dma.vmem_to_hbm [thread:$0]  (%p1188_p11), %s1128_s11, 2048, %s1126_s26, %s514_s22, %s804_s25, %s804_s25, %s805_s13  }
 0x24b PF: > { %s542_s17 = sand.u32 1, %s785_s18   ;;  %p1189_p8 = scmp.ne.s32.totalorder %s1186_s6, 0 }
 0x24c   : > { %p1190_p10 = scmp.ge.s32.totalorder %s797_s21, 2  ;;  %s543_s28 = scalar_lea.sflag [#allocation4], %s542_s17 }
 0x24e   : > { %p625_p0 = pnand %p1190_p10, %p1189_p8 }
 0x250   : > { %780 = dma.done.wait (!%p625_p0), %s543_s28, 2048  }
 0x251   : > { %782 = vsyncadd (!%p625_p0), %s543_s28, 4294965248  ;;  %p18_p2 = scmp.ge.s32.totalorder %s861_s24, 4   ;;  %s1191_s18 = smov %s789_s19 }
 0x252   : > { %s1192_s19 = smov %s793_s20  ;;  %s1193_s20 = smov %s873_s27 }
 0x253   : > { %s1194_s21 = smov %s861_s24  ;;  %20 = sbr.rel (!%p18_p2) target bundleno = 5 (0x5), region = 85 }
 0x25a   :  { %548 = vsyncpa [#allocation3], 1 }
 0x25b   :  { %550 = vsyncpa [#allocation3 + $0x1], 1 }
 0x25c   :  { %551 = vsyncpa [#allocation4], 1 }
 0x25d   :  { %553 = vsyncpa [#allocation4 + $0x1], 1 }

</bundles_post_ra>
